<compile_context>
chip_gen: v7x
topology: tpu7x:2x2x1
jax: 0.10.0
libtpu: 0.0.40
codegen_flags: <defaults>
</compile_context>

<pallas_src>
import functools
import operator

import jax
import jax.numpy as jnp
from jax.experimental import pallas as pl
from jax.experimental.pallas import tpu as pltpu

CODE_SIZE = 2
DATA_SHAPE = [28, 28]
HIDDEN = 200
OUT_DIM = functools.reduce(operator.mul, DATA_SHAPE)   # 784
TB_MAX = 1024                                          # max batch tile


def _round_up(x, m):
    return ((x + m - 1) // m) * m


def _decoder_kernel(x_ref, w1_ref, w2_ref, w3_ref, bias_ref, out_ref):
    x = x_ref[...]                                     # (TB, 2) f32

    b1 = bias_ref[0:1, :HIDDEN]                        # (1, 200)
    b2 = bias_ref[1:2, :HIDDEN]                        # (1, 200)
    b3 = bias_ref[2:3, :]                              # (1, 784)

    # fc1: K=2 contraction -> two VPU broadcast-FMAs (an MXU matmul would pad
    # K=2 up to the full contraction width).
    h1 = x[:, 0:1] * w1_ref[0:1, :] + x[:, 1:2] * w1_ref[1:2, :] + b1
    h1 = jnp.maximum(h1, 0.0)                          # (TB, 200) f32

    # fc2 / fc3 on the MXU with f32 accumulation.  Operand dtype follows the
    # prepared weights (f32 by default, bf16 if prepare_params cast them);
    # bias-add / ReLU stay in f32.
    h2 = jnp.dot(h1.astype(w2_ref.dtype), w2_ref[...],
                 preferred_element_type=jnp.float32) + b2
    h2 = jnp.maximum(h2, 0.0)                          # (TB, 200) f32

    logits = jnp.dot(h2.astype(w3_ref.dtype), w3_ref[...],
                     preferred_element_type=jnp.float32) + b3
    out_ref[...] = logits.astype(out_ref.dtype)        # (TB, 784)


def prepare_params(params, matmul_dtype=jnp.float32):
    """One-time parameter prep, hoisted out of the per-call forward.

    Packs the three biases into one (3, 784) array (single DMA) and optionally
    pre-casts the MXU weights to bf16 (v5e / v7x MXU-rate path).
    """
    w1, b1, w2, b2, w3, b3 = params
    bias = jnp.zeros((3, OUT_DIM), jnp.float32)
    bias = bias.at[0, :HIDDEN].set(b1)
    bias = bias.at[1, :HIDDEN].set(b2)
    bias = bias.at[2, :].set(b3)
    return (w1.astype(jnp.float32),
            w2.astype(matmul_dtype),
            w3.astype(matmul_dtype),
            bias)


@jax.jit
def decoder_forward(code, prepped):
    """Returns Bernoulli logits of shape (B, 28, 28)."""
    w1, w2, w3, bias = prepped
    B = code.shape[0]

    # Balanced batch tiling with >= 2 grid steps (so both v7x TensorCores get
    # work) when the batch is large enough; padded-row waste < 8 rows/tile.
    num_tiles = max(2, pl.cdiv(B, TB_MAX)) if B >= 16 else 1
    TB = _round_up(pl.cdiv(B, num_tiles), 8)
    num_tiles = pl.cdiv(B, TB)
    B_pad = num_tiles * TB
    code_p = code if B_pad == B else jnp.pad(code, ((0, B_pad - B), (0, 0)))

    flops = 2 * B_pad * (CODE_SIZE * HIDDEN + HIDDEN * HIDDEN
                         + HIDDEN * OUT_DIM)
    weight_bytes = sum(int(a.size) * a.dtype.itemsize
                       for a in (w1, w2, w3, bias))
    bytes_accessed = weight_bytes + 4 * B_pad * (CODE_SIZE + OUT_DIM)

    def resident(shape):
        # Constant block index -> stays VMEM-resident; single buffer suffices.
        return pl.BlockSpec(shape, lambda i: (0, 0),
                            pipeline_mode=pl.Buffered(1))

    logits2d = pl.pallas_call(
        _decoder_kernel,
        out_shape=jax.ShapeDtypeStruct((B_pad, OUT_DIM), jnp.float32),
        grid=(num_tiles,),
        in_specs=[
            pl.BlockSpec((TB, CODE_SIZE), lambda i: (i, 0)),  # code tile
            resident((CODE_SIZE, HIDDEN)),                    # w1
            resident((HIDDEN, HIDDEN)),                       # w2
            resident((HIDDEN, OUT_DIM)),                      # w3
            resident((3, OUT_DIM)),                           # packed biases
        ],
        out_specs=pl.BlockSpec((TB, OUT_DIM), lambda i: (i, 0)),
        compiler_params=pltpu.CompilerParams(
            dimension_semantics=("parallel",),
            vmem_limit_bytes=32 << 20),
        cost_estimate=pl.CostEstimate(
            flops=flops, transcendentals=0, bytes_accessed=bytes_accessed),
    )(code_p, w1, w2, w3, bias)

    out = logits2d if B_pad == B else logits2d[:B]
    # Contiguous (B, 784) -> (B, 28, 28): metadata-only, no extra HBM pass.
    return out.reshape([-1] + DATA_SHAPE)


def init_params(key):
    """Deterministic init mirroring nn.Linear default (U[-1/sqrt(fan_in), ..])."""
    def linear(k, fan_in, fan_out):
        kw, kb = jax.random.split(k)
        bound = 1.0 / jnp.sqrt(fan_in)
        # stored as (in, out) so the kernel does x @ W
        w = jax.random.uniform(kw, (fan_in, fan_out), jnp.float32,
                               -bound, bound)
        b = jax.random.uniform(kb, (fan_out,), jnp.float32, -bound, bound)
        return w, b

    k1, k2, k3 = jax.random.split(key, 3)
    w1, b1 = linear(k1, CODE_SIZE, HIDDEN)
    w2, b2 = linear(k2, HIDDEN, HIDDEN)
    w3, b3 = linear(k3, HIDDEN, OUT_DIM)
    return (w1, b1, w2, b2, w3, b3)


def _reference(code, params):
    w1, b1, w2, b2, w3, b3 = params
    h1 = jax.nn.relu(code @ w1 + b1)
    h2 = jax.nn.relu(h1 @ w2 + b2)
    logits = h2 @ w3 + b3
    return logits.reshape([-1] + DATA_SHAPE)


if __name__ == "__main__":
    key = jax.random.PRNGKey(0)
    k_params, k_code = jax.random.split(key)
    params = init_params(k_params)

    # f32 path (exact vs. PyTorch); pass matmul_dtype=jnp.bfloat16 for the
    # bf16 MXU path on v5e / v7x if the downstream precision budget allows.
    prepped = prepare_params(params)

    # batch=8: single-tile path; batch=20: balanced 2-tile path with padding.
    for batch in (8, 20):
        k_code, sub = jax.random.split(k_code)
        code = jax.random.normal(sub, (batch, CODE_SIZE), jnp.float32)

        logits = jax.block_until_ready(decoder_forward(code, prepped))
        ref = _reference(code, params)

        assert logits.shape == (batch, 28, 28), logits.shape
        assert jnp.allclose(logits, ref, atol=1e-4, rtol=1e-4), (
            float(jnp.max(jnp.abs(logits - ref))))

    print("KERNEL_OK")
</pallas_src>

<mosaic_0001>
module attributes {stable_mosaic.version = 11 : i64} {
  func.func @_decoder_kernel(%arg0: i32, %arg1: memref<8x2xf32, #tpu.memory_space<vmem>>, %arg2: memref<2x200xf32, #tpu.memory_space<vmem>>, %arg3: memref<200x200xf32, #tpu.memory_space<vmem>>, %arg4: memref<200x784xf32, #tpu.memory_space<vmem>>, %arg5: memref<3x784xf32, #tpu.memory_space<vmem>>, %arg6: memref<8x784xf32, #tpu.memory_space<vmem>>) attributes {dimension_semantics = [#tpu.dimension_semantics<parallel>], iteration_bounds = array<i64: 1>, scalar_prefetch = 0 : i64, scratch_operands = 0 : i64, tpu.core_type = #tpu.core_type<tc>, window_params = [{transform_indices = @transform_0, window_bounds = array<i64: 8, 2>}, {pipeline_mode = #tpu.pipeline_mode<synchronous>, transform_indices = @transform_1, window_bounds = array<i64: 2, 200>}, {pipeline_mode = #tpu.pipeline_mode<synchronous>, transform_indices = @transform_2, window_bounds = array<i64: 200, 200>}, {pipeline_mode = #tpu.pipeline_mode<synchronous>, transform_indices = @transform_3, window_bounds = array<i64: 200, 784>}, {pipeline_mode = #tpu.pipeline_mode<synchronous>, transform_indices = @transform_4, window_bounds = array<i64: 3, 784>}, {transform_indices = @transform_5, window_bounds = array<i64: 8, 784>}]} {
    %c0 = arith.constant 0 : index
    %c0_0 = arith.constant 0 : index
    %0 = vector.load %arg1[%c0, %c0_0] : memref<8x2xf32, #tpu.memory_space<vmem>>, vector<8x2xf32>
    %c0_1 = arith.constant 0 : index
    %c0_2 = arith.constant 0 : index
    %1 = vector.load %arg5[%c0_1, %c0_2] : memref<3x784xf32, #tpu.memory_space<vmem>>, vector<1x200xf32>
    %c1 = arith.constant 1 : index
    %c0_3 = arith.constant 0 : index
    %2 = vector.load %arg5[%c1, %c0_3] : memref<3x784xf32, #tpu.memory_space<vmem>>, vector<1x200xf32>
    %c2 = arith.constant 2 : index
    %c0_4 = arith.constant 0 : index
    %3 = vector.load %arg5[%c2, %c0_4] : memref<3x784xf32, #tpu.memory_space<vmem>>, vector<1x784xf32>
    %4 = vector.extract_strided_slice %0 {offsets = [0, 0], sizes = [8, 1], strides = [1, 1]} : vector<8x2xf32> to vector<8x1xf32>
    %c0_5 = arith.constant 0 : index
    %c0_6 = arith.constant 0 : index
    %5 = vector.load %arg2[%c0_5, %c0_6] : memref<2x200xf32, #tpu.memory_space<vmem>>, vector<1x200xf32>
    %6 = vector.broadcast %4 : vector<8x1xf32> to vector<8x200xf32>
    %7 = vector.broadcast %5 : vector<1x200xf32> to vector<8x200xf32>
    %8 = arith.mulf %6, %7 : vector<8x200xf32>
    %9 = vector.extract_strided_slice %0 {offsets = [0, 1], sizes = [8, 1], strides = [1, 1]} : vector<8x2xf32> to vector<8x1xf32>
    %c1_7 = arith.constant 1 : index
    %c0_8 = arith.constant 0 : index
    %10 = vector.load %arg2[%c1_7, %c0_8] : memref<2x200xf32, #tpu.memory_space<vmem>>, vector<1x200xf32>
    %11 = vector.broadcast %9 : vector<8x1xf32> to vector<8x200xf32>
    %12 = vector.broadcast %10 : vector<1x200xf32> to vector<8x200xf32>
    %13 = arith.mulf %11, %12 : vector<8x200xf32>
    %14 = arith.addf %8, %13 : vector<8x200xf32>
    %15 = vector.broadcast %1 : vector<1x200xf32> to vector<8x200xf32>
    %16 = arith.addf %14, %15 : vector<8x200xf32>
    %cst = arith.constant 0.000000e+00 : f32
    %17 = vector.broadcast %cst : f32 to vector<8x200xf32>
    %18 = arith.maximumf %16, %17 : vector<8x200xf32>
    %c0_9 = arith.constant 0 : index
    %c0_10 = arith.constant 0 : index
    %19 = vector.load %arg3[%c0_9, %c0_10] : memref<200x200xf32, #tpu.memory_space<vmem>>, vector<200x200xf32>
    %cst_11 = arith.constant dense<0.000000e+00> : vector<8x200xf32>
    %20 = tpu.matmul %18, %19, %cst_11 {dimension_numbers = #tpu.dot_dimension_numbers<[1], [0], [0], [1], [0, 0, 1, 1], [], []>} : vector<8x200xf32>, vector<200x200xf32>, vector<8x200xf32> -> vector<8x200xf32>
    %21 = vector.broadcast %2 : vector<1x200xf32> to vector<8x200xf32>
    %22 = arith.addf %20, %21 : vector<8x200xf32>
    %cst_12 = arith.constant 0.000000e+00 : f32
    %23 = vector.broadcast %cst_12 : f32 to vector<8x200xf32>
    %24 = arith.maximumf %22, %23 : vector<8x200xf32>
    %c0_13 = arith.constant 0 : index
    %c0_14 = arith.constant 0 : index
    %25 = vector.load %arg4[%c0_13, %c0_14] : memref<200x784xf32, #tpu.memory_space<vmem>>, vector<200x784xf32>
    %cst_15 = arith.constant dense<0.000000e+00> : vector<8x784xf32>
    %26 = tpu.matmul %24, %25, %cst_15 {dimension_numbers = #tpu.dot_dimension_numbers<[1], [0], [0], [1], [0, 0, 1, 1], [], []>} : vector<8x200xf32>, vector<200x784xf32>, vector<8x784xf32> -> vector<8x784xf32>
    %27 = vector.broadcast %3 : vector<1x784xf32> to vector<8x784xf32>
    %28 = arith.addf %26, %27 : vector<8x784xf32>
    %c0_16 = arith.constant 0 : index
    %c0_17 = arith.constant 0 : index
    %29 = vector.load %arg6[%c0_16, %c0_17] : memref<8x784xf32, #tpu.memory_space<vmem>>, vector<8x784xf32>
    tpu.vector_store %arg6[%c0_16, %c0_17], %28 {strides = array<i32>} : memref<8x784xf32, #tpu.memory_space<vmem>>, vector<8x784xf32>,
    return
  }
  func.func @transform_0(%arg0: i32) -> (i32, i32) {
    %c0_i32 = arith.constant 0 : i32
    %c0_i32_0 = arith.constant 0 : i32
    return %arg0, %c0_i32 : i32, i32
  }
  func.func @transform_1(%arg0: i32) -> (i32, i32) {
    %c0_i32 = arith.constant 0 : i32
    %c0_i32_0 = arith.constant 0 : i32
    %c0_i32_1 = arith.constant 0 : i32
    return %c0_i32, %c0_i32_0 : i32, i32
  }
  func.func @transform_2(%arg0: i32) -> (i32, i32) {
    %c0_i32 = arith.constant 0 : i32
    %c0_i32_0 = arith.constant 0 : i32
    %c0_i32_1 = arith.constant 0 : i32
    return %c0_i32, %c0_i32_0 : i32, i32
  }
  func.func @transform_3(%arg0: i32) -> (i32, i32) {
    %c0_i32 = arith.constant 0 : i32
    %c0_i32_0 = arith.constant 0 : i32
    %c0_i32_1 = arith.constant 0 : i32
    return %c0_i32, %c0_i32_0 : i32, i32
  }
  func.func @transform_4(%arg0: i32) -> (i32, i32) {
    %c0_i32 = arith.constant 0 : i32
    %c0_i32_0 = arith.constant 0 : i32
    %c0_i32_1 = arith.constant 0 : i32
    return %c0_i32, %c0_i32_0 : i32, i32
  }
  func.func @transform_5(%arg0: i32) -> (i32, i32) {
    %c0_i32 = arith.constant 0 : i32
    %c0_i32_0 = arith.constant 0 : i32
    return %arg0, %c0_i32 : i32, i32
  }
}

</mosaic_0001>

<bundles_post_ra>
// kernel: decoder_forward.1
= control target key start
LH: loop header
LB: loop body
LE: loop exit
PB: predicated region body
PF: predicated region fallthrough
CT: control target
= control target key end

     0   :  { %10 = vsyncpa [#allocation3], 0  ;;  %s1239_s0 = inlined_call_operand.vmem [shape: f32[8,2], index: 0, kind: input, shape index: {}]   ;;  %s1240_s1 = inlined_call_operand.vmem [shape: f32[2,200], index: 1, kind: input, shape index: {}]   ;;  %s1241_s2 = inlined_call_operand.hbm [shape: f32[200,200], index: 2, kind: input, shape index: {}]   ;;  %s1242_s3 = inlined_call_operand.hbm [shape: f32[200,784], index: 3, kind: input, shape index: {}]   ;;  %s1243_s4 = inlined_call_operand.hbm [shape: f32[3,784], index: 4, kind: input, shape index: {}]   ;;  %s1244_s5 = inlined_call_operand.vmem [shape: f32[8,784], index: 5, kind: output, shape index: {}]  }
   0x1   :  { %11 = vsyncpa [#allocation5], 0  ;;  %s1086_s18 = smov [#allocation4]   ;;  %s1016_s22 = scalar_lea.hbm %s1242_s3, 22400 }
   0x2   :  { %s33_s19 = sshll.u32 %s1086_s18, 4  ;;  %p1017_p0 = scmp.ne.s32.totalorder %s1242_s3, %s1016_s22  ;;  %s34_s19 = int_to_ptr.vmem [resolvable:$true] %s33_s19 }
   0x3   :  { %p1020_p1 = scmp.lt.u32.totalorder %s1016_s22, %s1242_s3 }
   0x5   :  { %p1022_p2 = pnand %p1020_p1, %p1017_p0 }
   0x7   :  { %1025 = shalt.err (!%p1022_p2)
}
   0x8   :  { %s1026_s27 = scalar_lea.vmem %s34_s19, 22400  ;;  %p1031_p4 = scmp.lt.s32.totalorder %s34_s19, %s34_s19 }
   0x9   :  { %p1027_p3 = scmp.ne.s32.totalorder %s34_s19, %s1026_s27  ;;  %p1032_p5 = scmp.lt.s32.totalorder %s1026_s27, %s1026_s27 }
   0xb   :  { %p1033_p6 = por %p1032_p5, %p1031_p4 }
   0xd   :  { %p1034_p7 = pnand %p1033_p6, %p1027_p3 }
   0xf   :  { %1037 = shalt.err (!%p1034_p7)
}
  0x10   :  { %s1087_s28 = smov 896   ;;  %s1088_s29 = smov 56  }
  0x11   :  { %39 = dma.hbm_to_vmem [thread:$0]  %s1242_s3, 22400, %s34_s19, [#allocation5], %s1087_s28, %s1087_s28, %s1088_s29  }
  0x12   :  { %s1089_s7 = smov [#allocation2]   ;;  %s1038_s11 = scalar_lea.hbm %s1241_s2, 6400 }
  0x13   :  { %s21_s8 = sshll.u32 %s1089_s7, 4  ;;  %p1039_p8 = scmp.ne.s32.totalorder %s1241_s2, %s1038_s11  ;;  %s22_s8 = int_to_ptr.vmem [resolvable:$true] %s21_s8 }
  0x14   :  { %p1042_p9 = scmp.lt.u32.totalorder %s1038_s11, %s1241_s2 }
  0x16   :  { %p1044_p10 = pnand %p1042_p9, %p1039_p8 }
  0x18   :  { %1047 = shalt.err (!%p1044_p10)
}
  0x19   :  { %s1048_s16 = scalar_lea.vmem %s22_s8, 6400  ;;  %p1053_p12 = scmp.lt.s32.totalorder %s22_s8, %s22_s8 }
  0x1a   :  { %p1049_p11 = scmp.ne.s32.totalorder %s22_s8, %s1048_s16  ;;  %p1054_p13 = scmp.lt.s32.totalorder %s1048_s16, %s1048_s16 }
  0x1c   :  { %p1055_p0 = por %p1054_p13, %p1053_p12 }
  0x1e   :  { %p1056_p1 = pnand %p1055_p0, %p1049_p11 }
  0x20   :  { %1059 = shalt.err (!%p1056_p1)
}
  0x21   :  { %s1090_s3 = smov 256   ;;  %s1091_s17 = smov 16  }
  0x22   :  { %27 = dma.hbm_to_vmem [thread:$0]  %s1241_s2, 6400, %s22_s8, [#allocation3], %s1090_s3, %s1090_s3, %s1091_s17  }
  0x23   :  { %s1092_s20 = smov [#allocation6]   ;;  %s1060_s24 = scalar_lea.hbm %s1243_s4, 448 }
  0x24   :  { %s46_s21 = sshll.u32 %s1092_s20, 4  ;;  %p1061_p2 = scmp.ne.s32.totalorder %s1243_s4, %s1060_s24  ;;  %s47_s21 = int_to_ptr.vmem [resolvable:$true] %s46_s21 }
  0x25   :  { %p1064_p3 = scmp.lt.u32.totalorder %s1060_s24, %s1243_s4 }
  0x27   :  { %p1066_p4 = pnand %p1064_p3, %p1061_p2 }
  0x29   :  { %1069 = shalt.err (!%p1066_p4)
}
  0x2a   :  { %s1070_s29 = scalar_lea.vmem %s47_s21, 448  ;;  %p1075_p6 = scmp.lt.s32.totalorder %s47_s21, %s47_s21 }
  0x2b   :  { %p1071_p5 = scmp.ne.s32.totalorder %s47_s21, %s1070_s29  ;;  %p1076_p7 = scmp.lt.s32.totalorder %s1070_s29, %s1070_s29 }
  0x2d   :  { %p1077_p8 = por %p1076_p7, %p1075_p6 }
  0x2f   :  { %p1078_p9 = pnand %p1077_p8, %p1071_p5 }
  0x31   :  { %1081 = shalt.err (!%p1078_p9)
}
  0x32   :  { %49 = dma.hbm_to_vmem [thread:$0]  %s1243_s4, 448, %s47_s21, [#allocation5]  }
  0x33   :  { %1082 = dma.done.wait [#allocation3], 6400  }
  0x34   :  { %1083 = vsyncadd [#allocation3], 4294960896 }
  0x35   :  { %1084 = dma.done.wait [#allocation5], 22848  }
  0x36   :  { %1085 = vsyncadd [#allocation5], 4294944448  ;;  %v1093_v0 = vmov 0   ;;  %v59_v1 = vld [vmem:[%s1239_s0] sm:$0xff]  ;;  %v121_v2 = vld [vmem:[#allocation2 + $0x8] sm:$0xff]  ;;  %v1094_v16 = vmov 1  }
  0x37   :  { %1014 = vset.pattern.permute.xlu0 %v1093_v0  ;;  %v123_v3 = vld [vmem:[#allocation2 + $0x18] sm:$0xff]  ;;  %v120_v5 = vld [vmem:[#allocation2] sm:$0xff]  ;;  %v122_v6 = vld [vmem:[#allocation2 + $0x10] sm:$0xff]  ;;  %vm181_vm0 = vcmask 588800   ;;  %vm761_vm1 = vcmask 130048  }
  0x38   :  { %68 = vperm.xlu0 %1014, %v59_v1   ;;  %v775_v4 = vpack.c.bf16 %v123_v3, %v121_v2  ;;  %v125_v7 = vld [vmem:[#allocation2 + $0x28] sm:$0xff]  ;;  %v777_v8 = vpack.c.bf16 %v122_v6, %v120_v5  ;;  %v127_v9 = vld [vmem:[#allocation2 + $0x38] sm:$0xff]  ;;  %v124_v10 = vld [vmem:[#allocation2 + $0x20] sm:$0xff] }
  0x39   :  { %v126_v11 = vld [vmem:[#allocation2 + $0x30] sm:$0xff]  ;;  %v779_v12 = vpack.c.bf16 %v127_v9, %v125_v7  ;;  %v129_v13 = vld [vmem:[#allocation2 + $0x48] sm:$0xff]  ;;  %v131_v14 = vld [vmem:[#allocation2 + $0x58] sm:$0xff] }
  0x3a   :  { %776 = vmatprep.subr.bf16.mxu0 %v775_v4  ;;  %v781_v15 = vpack.c.bf16 %v126_v11, %v124_v10  ;;  %v783_v17 = vpack.c.bf16 %v131_v14, %v129_v13  ;;  %v128_v18 = vld [vmem:[#allocation2 + $0x40] sm:$0xff]  ;;  %v130_v19 = vld [vmem:[#allocation2 + $0x50] sm:$0xff]  ;;  %v133_v20 = vld [vmem:[#allocation2 + $0x68] sm:$0xff] }
  0x3b   :  { %778 = vmatpush1.bf16.msra.mxu0 %v777_v8  ;;  %v135_v21 = vld [vmem:[#allocation2 + $0x78] sm:$0xff]  ;;  %v785_v22 = vpack.c.bf16 %v130_v19, %v128_v18  ;;  %v132_v24 = vld [vmem:[#allocation2 + $0x60] sm:$0xff]  ;;  %v134_v25 = vld [vmem:[#allocation2 + $0x70] sm:$0xff] }
  0x3c   :  { %1015 = vset.pattern.permute.xlu0 %v1094_v16  ;;  %780 = vmatprep.subr.bf16.mxu0 %v779_v12  ;;  %v787_v23 = vpack.c.bf16 %v135_v21, %v133_v20  ;;  %v137_v26 = vld [vmem:[#allocation2 + $0x88] sm:$0xff]  ;;  %v139_v27 = vld [vmem:[#allocation2 + $0x98] sm:$0xff]  ;;  %v789_v28 = vpack.c.bf16 %v134_v25, %v132_v24  ;;  %v136_v30 = vld [vmem:[#allocation2 + $0x80] sm:$0xff] }
  0x3d   :  { %87 = vperm.xlu0 %1015, %v59_v1   ;;  %v791_v29 = vpack.c.bf16 %v139_v27, %v137_v26  ;;  %v138_v31 = vld [vmem:[#allocation2 + $0x90] sm:$0xff]  ;;  %v141_v32 = vld [vmem:[#allocation2 + $0xa8] sm:$0xff]  ;;  %v143_v33 = vld [vmem:[#allocation2 + $0xb8] sm:$0xff] }
  0x3e   :  { %v793_v34 = vpack.c.bf16 %v138_v31, %v136_v30  ;;  %v795_v35 = vpack.c.bf16 %v143_v33, %v141_v32  ;;  %v140_v36 = vld [vmem:[#allocation2 + $0xa0] sm:$0xff]  ;;  %v142_v37 = vld [vmem:[#allocation2 + $0xb0] sm:$0xff]  ;;  %v145_v38 = vld [vmem:[#allocation2 + $0xc8] sm:$0xff] }
  0x3f   :  { %782 = vmatpush1.bf16.msra.mxu0 %v781_v15  ;;  %v147_v39 = vld [vmem:[#allocation2 + $0xd8] sm:$0xff]  ;;  %v266_v41 = vld [vmem:[#allocation4 + $0x40] sm:$0xff]  ;;  %v265_v44 = vld [vmem:[#allocation4 + $0x38] sm:$0xff]  ;;  %v797_v45 = vpack.c.bf16 %v142_v37, %v140_v36 }
  0x40   :  { %784 = vmatprep.subr.bf16.mxu0 %v783_v17  ;;  %v259_v40 = vld [vmem:[#allocation4 + $0x8] sm:$0xff]  ;;  %v258_v43 = vld [vmem:[#allocation4] sm:$0xff]  ;;  %v144_v46 = vld [vmem:[#allocation2 + $0xc0] sm:$0xff]  ;;  %v799_v49 = vpack.c.bf16 %v147_v39, %v145_v38 }
  0x41   :  { %v823_v42 = vpack.c.bf16 %v266_v41, %v259_v40  ;;  %v825_v47 = vpack.c.bf16 %v265_v44, %v258_v43  ;;  %v273_v48 = vld [vmem:[#allocation4 + $0x78] sm:$0xff]  ;;  %v146_v50 = vld [vmem:[#allocation2 + $0xd0] sm:$0xff]  ;;  %v280_v52 = vld [vmem:[#allocation4 + $0xb0] sm:$0xff] }
  0x42   :  { %v149_v51 = vld [vmem:[#allocation2 + $0xe8] sm:$0xff]  ;;  %v151_v53 = vld [vmem:[#allocation2 + $0xf8] sm:$0xff]  ;;  %v827_v54 = vpack.c.bf16 %v280_v52, %v273_v48  ;;  %v272_v55 = vld [vmem:[#allocation4 + $0x70] sm:$0xff]  ;;  %v801_v60 = vpack.c.bf16 %v146_v50, %v144_v46 }
  0x43   :  { %786 = vmatpush1.bf16.msra.mxu0 %v785_v22  ;;  %824 = vmatprep.subr.bf16.mxu1 %v823_v42  ;;  %v279_v56 = vld [vmem:[#allocation4 + $0xa8] sm:$0xff]  ;;  %v294_v59 = vld [vmem:[#allocation4 + $0x120] sm:$0xff]  ;;  %v148_v61 = vld [vmem:[#allocation2 + $0xe0] sm:$0xff]  ;;  %v803_v0 = vpack.c.bf16 %v151_v53, %v149_v51 }
  0x44   :  { %788 = vmatprep.subr.bf16.mxu0 %v787_v23  ;;  %826 = vmatpush1.bf16.msra.mxu1 %v825_v47  ;;  %v829_v57 = vpack.c.bf16 %v279_v56, %v272_v55  ;;  %v287_v58 = vld [vmem:[#allocation4 + $0xe8] sm:$0xff]  ;;  %v286_v63 = vld [vmem:[#allocation4 + $0xe0] sm:$0xff]  ;;  %v153_v2 = vld [vmem:[#allocation2 + $0x108] sm:$0xff] }
  0x45   :  { %828 = vmatprep.subr.bf16.mxu1 %v827_v54  ;;  %v831_v62 = vpack.c.bf16 %v294_v59, %v287_v58  ;;  %v150_v1 = vld [vmem:[#allocation2 + $0xf0] sm:$0xff]  ;;  %v293_v3 = vld [vmem:[#allocation4 + $0x118] sm:$0xff]  ;;  %v155_v4 = vld [vmem:[#allocation2 + $0x118] sm:$0xff] }
  0x46   :  { %v833_v5 = vpack.c.bf16 %v293_v3, %v286_v63  ;;  %v301_v6 = vld [vmem:[#allocation4 + $0x158] sm:$0xff]  ;;  %v308_v7 = vld [vmem:[#allocation4 + $0x190] sm:$0xff]  ;;  %v307_v10 = vld [vmem:[#allocation4 + $0x188] sm:$0xff]  ;;  %v805_v11 = vpack.c.bf16 %v150_v1, %v148_v61  ;;  %v807_v13 = vpack.c.bf16 %v155_v4, %v153_v2 }
  0x47   :  { %790 = vmatpush1.bf16.msra.mxu0 %v789_v28  ;;  %v835_v8 = vpack.c.bf16 %v308_v7, %v301_v6  ;;  %v300_v9 = vld [vmem:[#allocation4 + $0x150] sm:$0xff]  ;;  %v315_v12 = vld [vmem:[#allocation4 + $0x1c8] sm:$0xff]  ;;  %v154_v15 = vld [vmem:[#allocation2 + $0x110] sm:$0xff] }
  0x48   :  { %792 = vmatprep.subr.bf16.mxu0 %v791_v29  ;;  %830 = vmatpush1.bf16.msra.mxu1 %v829_v57  ;;  %v152_v14 = vld [vmem:[#allocation2 + $0x100] sm:$0xff]  ;;  %v322_v16 = vld [vmem:[#allocation4 + $0x200] sm:$0xff]  ;;  %v157_v17 = vld [vmem:[#allocation2 + $0x128] sm:$0xff]  ;;  %v837_v19 = vpack.c.bf16 %v307_v10, %v300_v9 }
  0x49   :  { %832 = vmatprep.subr.bf16.mxu1 %v831_v62  ;;  %v159_v18 = vld [vmem:[#allocation2 + $0x138] sm:$0xff]  ;;  %v839_v20 = vpack.c.bf16 %v322_v16, %v315_v12  ;;  %v314_v21 = vld [vmem:[#allocation4 + $0x1c0] sm:$0xff]  ;;  %v321_v22 = vld [vmem:[#allocation4 + $0x1f8] sm:$0xff]  ;;  %v809_v23 = vpack.c.bf16 %v154_v15, %v152_v14 }
  0x4a   :  { %v329_v24 = vld [vmem:[#allocation4 + $0x238] sm:$0xff]  ;;  %v336_v25 = vld [vmem:[#allocation4 + $0x270] sm:$0xff]  ;;  %v811_v26 = vpack.c.bf16 %v159_v18, %v157_v17  ;;  %v158_v28 = vld [vmem:[#allocation2 + $0x130] sm:$0xff]  ;;  %v841_v31 = vpack.c.bf16 %v321_v22, %v314_v21  ;;  %v72_v18 = vlaneseq }
  0x4b   :  { %794 = vmatpush1.bf16.msra.mxu0 %v793_v34  ;;  %v156_v27 = vld [vmem:[#allocation2 + $0x120] sm:$0xff]  ;;  %v161_v29 = vld [vmem:[#allocation2 + $0x148] sm:$0xff]  ;;  %v163_v30 = vld [vmem:[#allocation2 + $0x158] sm:$0xff]  ;;  %v843_v32 = vpack.c.bf16 %v336_v25, %v329_v24 }
  0x4c   :  { %796 = vmatprep.subr.bf16.mxu0 %v795_v35  ;;  %834 = vmatpush1.bf16.msra.mxu1 %v833_v5  ;;  %v328_v33 = vld [vmem:[#allocation4 + $0x230] sm:$0xff]  ;;  %v335_v34 = vld [vmem:[#allocation4 + $0x268] sm:$0xff]  ;;  %v813_v35 = vpack.c.bf16 %v158_v28, %v156_v27  ;;  %v350_v37 = vld [vmem:[#allocation4 + $0x2e0] sm:$0xff]  ;;  %v815_v38 = vpack.c.bf16 %v163_v30, %v161_v29 }
  0x4d   :  { %836 = vmatprep.subr.bf16.mxu1 %v835_v8  ;;  %v343_v36 = vld [vmem:[#allocation4 + $0x2a8] sm:$0xff]  ;;  %v160_v39 = vld [vmem:[#allocation2 + $0x140] sm:$0xff]  ;;  %v162_v40 = vld [vmem:[#allocation2 + $0x150] sm:$0xff]  ;;  %v845_v43 = vpack.c.bf16 %v335_v34, %v328_v33 }
  0x4e   :  { %v165_v41 = vld [vmem:[#allocation2 + $0x168] sm:$0xff]  ;;  %v167_v42 = vld [vmem:[#allocation2 + $0x178] sm:$0xff]  ;;  %v847_v44 = vpack.c.bf16 %v350_v37, %v343_v36  ;;  %v817_v47 = vpack.c.bf16 %v162_v40, %v160_v39  ;;  %v164_v51 = vld [vmem:[#allocation2 + $0x160] sm:$0xff] }
  0x4f   :  { %798 = vmatpush1.bf16.msra.mxu0 %v797_v45  ;;  %v342_v45 = vld [vmem:[#allocation4 + $0x2a0] sm:$0xff]  ;;  %v349_v46 = vld [vmem:[#allocation4 + $0x2d8] sm:$0xff]  ;;  %v819_v50 = vpack.c.bf16 %v167_v42, %v165_v41  ;;  %v356_v55 = vld [vmem:[#allocation4 + $0x310] sm:$0xff] }
  0x50   :  { %800 = vmatprep.subr.bf16.mxu0 %v799_v49  ;;  %838 = vmatpush1.bf16.msra.mxu1 %v837_v19  ;;  %v357_v48 = vld [vmem:[#allocation4 + $0x318] sm:$0xff]  ;;  %v364_v49 = vld [vmem:[#allocation4 + $0x350] sm:$0xff]  ;;  %v166_v52 = vld [vmem:[#allocation2 + $0x170] sm:$0xff]  ;;  %v849_v53 = vpack.c.bf16 %v349_v46, %v342_v45  ;;  %v1166_v19 = vshrl.u32 %v72_v18, 7 }
  0x51   :  { %840 = vmatprep.subr.bf16.mxu1 %v839_v20  ;;  %v851_v54 = vpack.c.bf16 %v364_v49, %v357_v48  ;;  %v363_v56 = vld [vmem:[#allocation4 + $0x348] sm:$0xff]  ;;  %v821_v57 = vpack.c.bf16 %v166_v52, %v164_v51  ;;  %v378_v59 = vld [vmem:[#allocation4 + $0x3c0] sm:$0xff]  ;;  %v261_v61 = vld [vmem:[#allocation4 + $0x18] sm:$0xff] }
  0x52   :  { %v371_v58 = vld [vmem:[#allocation4 + $0x388] sm:$0xff]  ;;  %v268_v62 = vld [vmem:[#allocation4 + $0x50] sm:$0xff]  ;;  %v853_v63 = vpack.c.bf16 %v363_v56, %v356_v55  ;;  %v370_v1 = vld [vmem:[#allocation4 + $0x380] sm:$0xff]  ;;  %v1169_v20 = vsub.s32 0, %v1166_v19  ;;  %v1172_v21 = vsub.s32 1, %v1166_v19 }
  0x53   :  { %802 = vmatpush1.bf16.msra.mxu0 %v801_v60  ;;  %v169_v60 = vld [vmem:[#allocation2 + $0x188] sm:$0xff]  ;;  %v392_v4 = vld [vmem:[#allocation4 + $0x430] sm:$0xff]  ;;  %v871_v6 = vpack.c.bf16 %v268_v62, %v261_v61  ;;  %v391_v10 = vld [vmem:[#allocation4 + $0x428] sm:$0xff] }
  0x54   :  { %804 = vmatprep.subr.bf16.mxu0 %v803_v0  ;;  %842 = vmatpush1.bf16.msra.mxu1 %v841_v31  ;;  %v855_v0 = vpack.c.bf16 %v378_v59, %v371_v58  ;;  %v377_v2 = vld [vmem:[#allocation4 + $0x3b8] sm:$0xff]  ;;  %v168_v5 = vld [vmem:[#allocation2 + $0x180] sm:$0xff]  ;;  %v406_v12 = vld [vmem:[#allocation4 + $0x4a0] sm:$0xff] }
  0x55   :  { %844 = vmatprep.subr.bf16.mxu1 %v843_v32  ;;  %v385_v3 = vld [vmem:[#allocation4 + $0x3f8] sm:$0xff]  ;;  %v857_v7 = vpack.c.bf16 %v377_v2, %v370_v1  ;;  %v384_v9 = vld [vmem:[#allocation4 + $0x3f0] sm:$0xff]  ;;  %v398_v15 = vld [vmem:[#allocation4 + $0x460] sm:$0xff] }
  0x56   :  { %v859_v8 = vpack.c.bf16 %v392_v4, %v385_v3  ;;  %v405_v16 = vld [vmem:[#allocation4 + $0x498] sm:$0xff]  ;;  %v65_v22 = vld [vmem:[%s1240_s1] ss:$2 sm:$0x3]  ;;  %v267_v40 = vld [vmem:[#allocation4 + $0x48] sm:$0xff] }
  0x57   :  { %806 = vmatpush1.bf16.msra.mxu0 %v805_v11  ;;  %v399_v11 = vld [vmem:[#allocation4 + $0x468] sm:$0xff]  ;;  %v865_v17 = vpack.c.bf16 %v405_v16, %v398_v15  ;;  %v75_v25 = vrot.slane %v65_v22, %v1169_v20  ;;  %v60_v29 = vld [vmem:[#allocation6] ss:$4 sm:$0x3]  ;;  %v260_v39 = vld [vmem:[#allocation4 + $0x10] sm:$0xff] }
  0x58   :  { %808 = vmatprep.subr.bf16.mxu0 %v807_v13  ;;  %846 = vmatpush1.bf16.msra.mxu1 %v845_v43  ;;  %v861_v13 = vpack.c.bf16 %v391_v10, %v384_v9  ;;  %v863_v14 = vpack.c.bf16 %v406_v12, %v399_v11  ;;  %v109_v31 = vrot.slane %v60_v29, %v1169_v20  ;;  %v275_v43 = vld [vmem:[#allocation4 + $0x88] sm:$0xff]  ;;  %v274_v49 = vld [vmem:[#allocation4 + $0x80] sm:$0xff]  ;;  %v289_v51 = vld [vmem:[#allocation4 + $0xf8] sm:$0xff] }
  0x59   :  { %848 = vmatprep.subr.bf16.mxu1 %v847_v44  ;;  %v113_v32 = vrot.slane %v60_v29, %v1172_v21  ;;  %v282_v44 = vld [vmem:[#allocation4 + $0xc0] sm:$0xff]  ;;  %v296_v52 = vld [vmem:[#allocation4 + $0x130] sm:$0xff]  ;;  %v295_v56 = vld [vmem:[#allocation4 + $0x128] sm:$0xff] }
  0x5a   :  { %v875_v48 = vpack.c.bf16 %v282_v44, %v275_v43  ;;  %v288_v55 = vld [vmem:[#allocation4 + $0xf0] sm:$0xff]  ;;  %v310_v58 = vld [vmem:[#allocation4 + $0x1a0] sm:$0xff]  ;;  %v309_v62 = vld [vmem:[#allocation4 + $0x198] sm:$0xff] }
  0x5b   :  { %810 = vmatpush1.bf16.msra.mxu0 %v809_v23  ;;  %v769_v23 = vld [vmem:[%s1240_s1 + $0x1] ss:$2 sm:$0x3]  ;;  %v881_v59 = vpack.c.bf16 %v295_v56, %v288_v55  ;;  %v302_v61 = vld [vmem:[#allocation4 + $0x160] sm:$0xff]  ;;  %v323_v4 = vld [vmem:[#allocation4 + $0x208] sm:$0xff] }
  0x5c   :  { %812 = vmatprep.subr.bf16.mxu0 %v811_v26  ;;  %850 = vmatpush1.bf16.msra.mxu1 %v849_v53  ;;  %v79_v26 = vrot.slane %v65_v22, %v1172_v21  ;;  %v94_v27 = vrot.slane %v769_v23, %v1169_v20  ;;  %v98_v28 = vrot.slane %v769_v23, %v1172_v21  ;;  %v316_v3 = vld [vmem:[#allocation4 + $0x1d0] sm:$0xff]  ;;  %v330_v9 = vld [vmem:[#allocation4 + $0x240] sm:$0xff]  ;;  %v337_v10 = vld [vmem:[#allocation4 + $0x278] sm:$0xff] }
  0x5d   :  { %852 = vmatprep.subr.bf16.mxu1 %v851_v54  ;;  %v879_v54 = vpack.c.bf16 %v296_v52, %v289_v51  ;;  %v885_v1 = vpack.c.bf16 %v309_v62, %v302_v61  ;;  %v345_v11 = vld [vmem:[#allocation4 + $0x2b8] sm:$0xff]  ;;  %v352_v12 = vld [vmem:[#allocation4 + $0x2f0] sm:$0xff]  ;;  %v351_v16 = vld [vmem:[#allocation4 + $0x2e8] sm:$0xff] }
  0x5e   :  { %v344_v15 = vld [vmem:[#allocation4 + $0x2b0] sm:$0xff]  ;;  %v366_v18 = vld [vmem:[#allocation4 + $0x360] sm:$0xff]  ;;  %v407_v43 = vld [vmem:[#allocation4 + $0x4a8] sm:$0xff] }
  0x5f   :  { %814 = vmatpush1.bf16.msra.mxu0 %v813_v35  ;;  %v897_v22 = vpack.c.bf16 %v351_v16, %v344_v15  ;;  %v419_v51 = vld [vmem:[#allocation4 + $0x508] sm:$0xff]  ;;  %v421_v55 = vld [vmem:[#allocation4 + $0x518] sm:$0xff]  ;;  %v428_v61 = vld [vmem:[#allocation4 + $0x550] sm:$0xff] }
  0x60   :  { %816 = vmatprep.subr.bf16.mxu0 %v815_v38  ;;  %854 = vmatpush1.bf16.msra.mxu1 %v853_v63  ;;  %v317_v63 = vld [vmem:[#allocation4 + $0x1d8] sm:$0xff]  ;;  %v270_v62 = vld [vmem:[#allocation4 + $0x60] sm:$0xff] }
  0x61   :  { %856 = vmatprep.subr.bf16.mxu1 %v855_v0  ;;  %v324_v0 = vld [vmem:[#allocation4 + $0x210] sm:$0xff] }
  0x62   :  { %v887_v2 = vpack.c.bf16 %v324_v0, %v317_v63  ;;  %v1095_v0 = vmov 0.0|0.0  }
  0x63   :  { %818 = vmatpush1.bf16.msra.mxu0 %v817_v47  ;;  %v873_v47 = vpack.c.bf16 %v267_v40, %v260_v39  ;;  %v408_v39 = vld [vmem:[#allocation4 + $0x4b0] sm:$0xff] }
  0x64   :  { %820 = vmatprep.subr.bf16.mxu0 %v819_v50  ;;  %858 = vmatpush1.bf16.msra.mxu1 %v857_v7  ;;  %v281_v50 = vld [vmem:[#allocation4 + $0xb8] sm:$0xff]  ;;  %v889_v7 = vpack.c.bf16 %v323_v4, %v316_v3 }
  0x65   :  { %860 = vmatprep.subr.bf16.mxu1 %v859_v8  ;;  %v877_v53 = vpack.c.bf16 %v281_v50, %v274_v49  ;;  %v422_v49 = vld [vmem:[#allocation4 + $0x520] sm:$0xff]  ;;  %v412_v50 = vld [vmem:[#allocation4 + $0x4d0] sm:$0xff] }
  0x67   :  { %822 = vmatpush1.bf16.msra.mxu0 %v821_v57  ;;  %v303_v57 = vld [vmem:[#allocation4 + $0x168] sm:$0xff] }
  0x68   :  { %233 = vmatprep.subr.mxu0 %v169_v60  ;;  %862 = vmatpush1.bf16.msra.mxu1 %v861_v13  ;;  %v883_v60 = vpack.c.bf16 %v310_v58, %v303_v57  ;;  %v893_v13 = vpack.c.bf16 %v337_v10, %v330_v9  ;;  %v427_v57 = vld [vmem:[#allocation4 + $0x548] sm:$0xff]  ;;  %v429_v58 = vld [vmem:[#allocation4 + $0x558] sm:$0xff]  ;;  %v264_v9 = vld [vmem:[#allocation4 + $0x30] sm:$0xff] }
  0x69   :  { %864 = vmatprep.subr.bf16.mxu1 %v863_v14  ;;  %v895_v14 = vpack.c.bf16 %v352_v12, %v345_v11  ;;  %v271_v10 = vld [vmem:[#allocation4 + $0x68] sm:$0xff]  ;;  %v277_v12 = vld [vmem:[#allocation4 + $0x98] sm:$0xff] }
  0x6a   :  { %v968_v16 = vpack.c.bf16 %v271_v10, %v264_v9  ;;  %v368_v9 = vld [vmem:[#allocation4 + $0x370] sm:$0xff] }
  0x6b   :  { %234 = vmatpush1.msra.mxu0 %v168_v5  ;;  %v331_v5 = vld [vmem:[#allocation4 + $0x248] sm:$0xff] }
  0x6c   :  { %872 = vmatprep.subr.bf16.mxu0 %v871_v6  ;;  %866 = vmatpush1.bf16.msra.mxu1 %v865_v17  ;;  %v338_v6 = vld [vmem:[#allocation4 + $0x280] sm:$0xff]  ;;  %v359_v17 = vld [vmem:[#allocation4 + $0x328] sm:$0xff] }
  0x6d   :  { %v891_v8 = vpack.c.bf16 %v338_v6, %v331_v5  ;;  %v899_v23 = vpack.c.bf16 %v366_v18, %v359_v17  ;;  %v262_v5 = vld [vmem:[#allocation4 + $0x20] sm:$0xff]  ;;  %v276_v17 = vld [vmem:[#allocation4 + $0x90] sm:$0xff] }
  0xb7   :  { %v69_v24 = vpop.permute.xlu0 %68 }
  0xb8   :  { %v82_v33 = vmul.f32 %v75_v25, %v69_v24  ;;  %v83_v34 = vmul.f32 %v79_v26, %v69_v24  ;;  %v358_v24 = vld [vmem:[#allocation4 + $0x320] sm:$0xff]  ;;  %v365_v25 = vld [vmem:[#allocation4 + $0x358] sm:$0xff] }
  0xb9   :  { %v373_v26 = vld [vmem:[#allocation4 + $0x398] sm:$0xff] }
  0xbc   :  { %v88_v30 = vpop.permute.xlu0 %87 }
  0xbd   :  { %v101_v35 = vmul.f32 %v94_v27, %v88_v30  ;;  %v102_v36 = vmul.f32 %v98_v28, %v88_v30  ;;  %v380_v27 = vld [vmem:[#allocation4 + $0x3d0] sm:$0xff]  ;;  %v901_v28 = vpack.c.bf16 %v365_v25, %v358_v24  ;;  %v285_v24 = vld [vmem:[#allocation4 + $0xd8] sm:$0xff] }
  0xbe   :  { %v903_v29 = vpack.c.bf16 %v380_v27, %v373_v26  ;;  %v372_v30 = vld [vmem:[#allocation4 + $0x390] sm:$0xff]  ;;  %v291_v26 = vld [vmem:[#allocation4 + $0x108] sm:$0xff]  ;;  %v298_v27 = vld [vmem:[#allocation4 + $0x140] sm:$0xff] }
  0xbf   :  { %v103_v37 = vadd.f32 %v101_v35, %v82_v33  ;;  %v104_v38 = vadd.f32 %v102_v36, %v83_v34  ;;  %v394_v33 = vld [vmem:[#allocation4 + $0x440] sm:$0xff] }
  0xc0   :  { %v386_v36 = vld [vmem:[#allocation4 + $0x400] sm:$0xff] }
  0xc1   :  { %v117_v41 = vadd.f32 %v113_v32, %v104_v38  ;;  %v116_v42 = vadd.f32 %v109_v31, %v103_v37  ;;  %v379_v31 = vld [vmem:[#allocation4 + $0x3c8] sm:$0xff]  ;;  %v393_v37 = vld [vmem:[#allocation4 + $0x438] sm:$0xff] }
  0xc2   :  { %v387_v32 = vld [vmem:[#allocation4 + $0x408] sm:$0xff]  ;;  %v905_v34 = vpack.c.bf16 %v379_v31, %v372_v30  ;;  %v401_v38 = vld [vmem:[#allocation4 + $0x478] sm:$0xff]  ;;  %v909_v40 = vpack.c.bf16 %v393_v37, %v386_v36  ;;  %v290_v30 = vld [vmem:[#allocation4 + $0x100] sm:$0xff]  ;;  %v927_v31 = vpack.c.bf16 %v298_v27, %v291_v26 }
  0xc3   :  { %v119_v45 = vmax.f32 %v117_v41, 0.0  ;;  %v118_v46 = vmax.f32 %v116_v42, 0.0  ;;  %v907_v35 = vpack.c.bf16 %v394_v33, %v387_v32  ;;  %v911_v41 = vpack.c.bf16 %v408_v39, %v401_v38  ;;  %v400_v42 = vld [vmem:[#allocation4 + $0x470] sm:$0xff]  ;;  %v297_v32 = vld [vmem:[#allocation4 + $0x138] sm:$0xff] }
  0xc4   :  { %v913_v44 = vpack.c.bf16 %v407_v43, %v400_v42  ;;  %v292_v33 = vld [vmem:[#allocation4 + $0x110] sm:$0xff]  ;;  %v929_v37 = vpack.c.bf16 %v297_v32, %v290_v30  ;;  %v306_v42 = vld [vmem:[#allocation4 + $0x180] sm:$0xff]  ;;  %v313_v43 = vld [vmem:[#allocation4 + $0x1b8] sm:$0xff] }
  0xc5   :  { %770 = vmatprep.mubr.msk.f32.mxu0 %vm181_vm0, %v119_v45  ;;  %v413_v45 = vld [vmem:[#allocation4 + $0x4d8] sm:$0xff]  ;;  %v312_v36 = vld [vmem:[#allocation4 + $0x1b0] sm:$0xff] }
  0xc6   :  { %250 = vmatmul.mubr.f32.vlgmr.msra.gmra.mrb[0].mxu0 %v118_v46  ;;  %v420_v46 = vld [vmem:[#allocation4 + $0x510] sm:$0xff]  ;;  %v381_v27 = vld [vmem:[#allocation4 + $0x3d8] sm:$0xff] }
  0xc7   :  { %874 = vmatpush1.bf16.msra.mxu0 %v873_v47  ;;  %v415_v47 = vld [vmem:[#allocation4 + $0x4e8] sm:$0xff]  ;;  %v304_v39 = vld [vmem:[#allocation4 + $0x170] sm:$0xff]  ;;  %v389_v30 = vld [vmem:[#allocation4 + $0x418] sm:$0xff] }
  0xc8   :  { %876 = vmatprep.subr.bf16.mxu0 %v875_v48  ;;  %v867_v48 = vpack.c.bf16 %v420_v46, %v413_v45  ;;  %v915_v52 = vpack.c.bf16 %v422_v49, %v415_v47  ;;  %v326_v45 = vld [vmem:[#allocation4 + $0x220] sm:$0xff]  ;;  %v977_v47 = vpack.c.bf16 %v313_v43, %v306_v42 }
  0xc9   :  { %v402_v43 = vld [vmem:[#allocation4 + $0x480] sm:$0xff] }
  0xca   :  { %868 = vmatprep.subr.bf16.mxu1 %v867_v48  ;;  %v318_v48 = vld [vmem:[#allocation4 + $0x1e0] sm:$0xff] }
  0xcb   :  { %878 = vmatpush1.bf16.msra.mxu0 %v877_v53  ;;  %v869_v53 = vpack.c.bf16 %v419_v51, %v412_v50  ;;  %v325_v50 = vld [vmem:[#allocation4 + $0x218] sm:$0xff]  ;;  %v320_v51 = vld [vmem:[#allocation4 + $0x1f0] sm:$0xff] }
  0xcc   :  { %880 = vmatprep.subr.bf16.mxu0 %v879_v54  ;;  %v414_v54 = vld [vmem:[#allocation4 + $0x4e0] sm:$0xff] }
  0xcd   :  { %v917_v56 = vpack.c.bf16 %v421_v55, %v414_v54  ;;  %870 = vmatpush1.bf16.msra.mxu1 %v869_v53  ;;  %v333_v53 = vld [vmem:[#allocation4 + $0x258] sm:$0xff]  ;;  %v340_v54 = vld [vmem:[#allocation4 + $0x290] sm:$0xff]  ;;  %v937_v55 = vpack.c.bf16 %v325_v50, %v318_v48 }
  0xce   :  { %520 = vmatprep.subr.mxu1 %v427_v57  ;;  %v332_v57 = vld [vmem:[#allocation4 + $0x250] sm:$0xff]  ;;  %v417_v48 = vld [vmem:[#allocation4 + $0x4f8] sm:$0xff] }
  0xcf   :  { %882 = vmatpush1.bf16.msra.mxu0 %v881_v59  ;;  %v263_v59 = vld [vmem:[#allocation4 + $0x28] sm:$0xff] }
  0xd0   :  { %884 = vmatprep.subr.bf16.mxu0 %v883_v60  ;;  %v426_v60 = vld [vmem:[#allocation4 + $0x540] sm:$0xff]  ;;  %v919_v63 = vpack.c.bf16 %v270_v62, %v263_v59  ;;  %v339_v59 = vld [vmem:[#allocation4 + $0x288] sm:$0xff] }
  0xd1   :  { %521 = vmatpush1.msra.mxu1 %v426_v60  ;;  %v334_v60 = vld [vmem:[#allocation4 + $0x260] sm:$0xff]  ;;  %v347_v62 = vld [vmem:[#allocation4 + $0x2c8] sm:$0xff] }
  0xd2   :  { %920 = vmatprep.subr.bf16.mxu1 %v919_v63  ;;  %v354_v63 = vld [vmem:[#allocation4 + $0x300] sm:$0xff] }
  0xd3   :  { %886 = vmatpush1.bf16.msra.mxu0 %v885_v1  ;;  %v62_v1 = vld [vmem:[#allocation6 + $0x1] ss:$4 sm:$0x3] }
  0xd4   :  { %888 = vmatprep.subr.bf16.mxu0 %v887_v2  ;;  %v174_v2 = vrot.slane %v62_v1, %v1169_v20  ;;  %v178_v3 = vrot.slane %v62_v1, %v1172_v21  ;;  %v941_v1 = vpack.c.bf16 %v339_v59, %v332_v57  ;;  %v431_v59 = vld [vmem:[#allocation4 + $0x568] sm:$0xff] }
  0xd7   :  { %890 = vmatpush1.bf16.msra.mxu0 %v889_v7 }
  0xd8   :  { %892 = vmatprep.subr.bf16.mxu0 %v891_v8  ;;  %v269_v8 = vld [vmem:[#allocation4 + $0x58] sm:$0xff] }
  0xd9   :  { %v921_v15 = vpack.c.bf16 %v269_v8, %v262_v5  ;;  %v353_v5 = vld [vmem:[#allocation4 + $0x2f8] sm:$0xff] }
  0xda   :  { %v361_v8 = vld [vmem:[#allocation4 + $0x338] sm:$0xff] }
  0xdb   :  { %894 = vmatpush1.bf16.msra.mxu0 %v893_v13  ;;  %v284_v13 = vld [vmem:[#allocation4 + $0xd0] sm:$0xff] }
  0xdc   :  { %896 = vmatprep.subr.bf16.mxu0 %v895_v14  ;;  %v923_v25 = vpack.c.bf16 %v284_v13, %v277_v12  ;;  %v360_v12 = vld [vmem:[#allocation4 + $0x330] sm:$0xff]  ;;  %v947_v13 = vpack.c.bf16 %v368_v9, %v361_v8 }
  0xdf   :  { %898 = vmatpush1.bf16.msra.mxu0 %v897_v22  ;;  %v283_v22 = vld [vmem:[#allocation4 + $0xc8] sm:$0xff] }
  0xe0   :  { %900 = vmatprep.subr.bf16.mxu0 %v899_v23  ;;  %v278_v23 = vld [vmem:[#allocation4 + $0xa0] sm:$0xff] }
  0xe3   :  { %902 = vmatpush1.bf16.msra.mxu0 %v901_v28  ;;  %v925_v28 = vpack.c.bf16 %v283_v22, %v276_v17  ;;  %v375_v17 = vld [vmem:[#allocation4 + $0x3a8] sm:$0xff]  ;;  %v382_v22 = vld [vmem:[#allocation4 + $0x3e0] sm:$0xff] }
  0xe4   :  { %904 = vmatprep.subr.bf16.mxu0 %v903_v29  ;;  %v971_v29 = vpack.c.bf16 %v285_v24, %v278_v23  ;;  %v951_v26 = vpack.c.bf16 %v382_v22, %v375_v17 }
  0xe7   :  { %906 = vmatpush1.bf16.msra.mxu0 %v905_v34  ;;  %v299_v34 = vld [vmem:[#allocation4 + $0x148] sm:$0xff] }
  0xe8   :  { %908 = vmatprep.subr.bf16.mxu0 %v907_v35  ;;  %v305_v35 = vld [vmem:[#allocation4 + $0x178] sm:$0xff]  ;;  %v974_v38 = vpack.c.bf16 %v299_v34, %v292_v33  ;;  %v388_v34 = vld [vmem:[#allocation4 + $0x410] sm:$0xff] }
  0xeb   :  { %910 = vmatpush1.bf16.msra.mxu0 %v909_v40  ;;  %v931_v40 = vpack.c.bf16 %v312_v36, %v305_v35  ;;  %v395_v36 = vld [vmem:[#allocation4 + $0x448] sm:$0xff] }
  0xec   :  { %912 = vmatprep.subr.bf16.mxu0 %v911_v41  ;;  %v311_v41 = vld [vmem:[#allocation4 + $0x1a8] sm:$0xff] }
  0xed   :  { %v933_v46 = vpack.c.bf16 %v311_v41, %v304_v39  ;;  %v403_v39 = vld [vmem:[#allocation4 + $0x488] sm:$0xff]  ;;  %v957_v41 = vpack.c.bf16 %v395_v36, %v388_v34 }
  0xef   :  { %914 = vmatpush1.bf16.msra.mxu0 %v913_v44  ;;  %v319_v44 = vld [vmem:[#allocation4 + $0x1e8] sm:$0xff] }
  0xf0   :  { %916 = vmatprep.subr.bf16.mxu0 %v915_v52  ;;  %v935_v49 = vpack.c.bf16 %v326_v45, %v319_v44  ;;  %v327_v52 = vld [vmem:[#allocation4 + $0x228] sm:$0xff]  ;;  %v409_v45 = vld [vmem:[#allocation4 + $0x4b8] sm:$0xff] }
  0xf1   :  { %v961_v50 = vpack.c.bf16 %v409_v45, %v402_v43 }
  0xf3   :  { %918 = vmatpush1.bf16.msra.mxu0 %v917_v56  ;;  %v980_v56 = vpack.c.bf16 %v327_v52, %v320_v51  ;;  %v416_v52 = vld [vmem:[#allocation4 + $0x4f0] sm:$0xff] }
  0xf4   :  { %591 = vmatprep.subr.mxu0 %v429_v58  ;;  %v939_v58 = vpack.c.bf16 %v340_v54, %v333_v53  ;;  %v423_v54 = vld [vmem:[#allocation4 + $0x528] sm:$0xff] }
  0xf5   :  { %v965_v57 = vpack.c.bf16 %v423_v54, %v416_v52 }
  0xf7   :  { %592 = vmatpush1.msra.mxu0 %v428_v61  ;;  %v341_v61 = vld [vmem:[#allocation4 + $0x298] sm:$0xff] }
  0xf8   :  { %967 = vmatprep.subr.bf16.mxu0 %v1095_v0 }
 0x199   :  { %v251_v4 = vpop.f32.mrb[0].mxu0 }
 0x19a   :  { %v252_v6 = vadd.f32 %v251_v4, %v174_v2  ;;  %v253_v7 = vpop.f32.mrb[1].mxu0  ;;  %v983_v2 = vpack.c.bf16 %v341_v61, %v334_v60  ;;  %v943_v4 = vpack.c.bf16 %v354_v63, %v347_v62  ;;  %v1096_v60 = vmov 0.0   ;;  %v430_v61 = vld [vmem:[#allocation4 + $0x560] sm:$0xff]  ;;  %v432_v62 = vld [vmem:[#allocation4 + $0x570] sm:$0xff] }
 0x19b   :  { %v254_v11 = vadd.f32 %v253_v7, %v178_v3  ;;  %v346_v3 = vld [vmem:[#allocation4 + $0x2c0] sm:$0xff]  ;;  %v355_v7 = vld [vmem:[#allocation4 + $0x308] sm:$0xff]  ;;  %v444_v63 = vsub.s32 2, %v1166_v19 }
 0x19c   :  { %v1190_v18 = vmax.f32 %v252_v6, 0.0  ;;  %v348_v6 = vld [vmem:[#allocation4 + $0x2d0] sm:$0xff]  ;;  %v945_v10 = vpack.c.bf16 %v353_v5, %v346_v3 }
 0x19d   :  { %v257_v14 = vmax.f32 %v254_v11, 0.0  ;;  %v986_v11 = vpack.c.bf16 %v355_v7, %v348_v6 }
 0x19f   :  { %771 = vmatprep.mubr.msk.f32.mxu1 %vm181_vm0, %v257_v14  ;;  %772 = vmatprep.mubr.msk.f32.mxu0 %vm181_vm0, %v257_v14 }
 0x1a0   :  { %537 = vmatmul.mubr.f32.vlgmr.msra.gmra.mrb[0].mxu1 %v1190_v18  ;;  %608 = vmatmul.mubr.f32.vlgmr.msra.gmra.mrb[2].mxu0 %v1190_v18 }
 0x1a1   :  { %922 = vmatpush1.bf16.msra.mxu1 %v921_v15  ;;  %969 = vmatpush1.bf16.msra.mxu0 %v968_v16  ;;  %v362_v15 = vld [vmem:[#allocation4 + $0x340] sm:$0xff]  ;;  %v369_v16 = vld [vmem:[#allocation4 + $0x378] sm:$0xff] }
 0x1a2   :  { %773 = vmatprep.mubr.msk.f32.mxu1 %vm181_vm0, %v257_v14  ;;  %774 = vmatprep.mubr.msk.f32.mxu0 %vm181_vm0, %v257_v14  ;;  %v367_v14 = vld [vmem:[#allocation4 + $0x368] sm:$0xff]  ;;  %v989_v24 = vpack.c.bf16 %v369_v16, %v362_v15 }
 0x1a3   :  { %924 = vmatprep.subr.bf16.mxu1 %v923_v25  ;;  %970 = vmatprep.subr.bf16.mxu0 %v1095_v0  ;;  %v949_v23 = vpack.c.bf16 %v367_v14, %v360_v12  ;;  %v374_v25 = vld [vmem:[#allocation4 + $0x3a0] sm:$0xff] }
 0x1a4   :  { %v953_v32 = vpack.c.bf16 %v381_v27, %v374_v25 }
 0x1a5   :  { %926 = vmatpush1.bf16.msra.mxu1 %v925_v28  ;;  %972 = vmatpush1.bf16.msra.mxu0 %v971_v29  ;;  %v376_v28 = vld [vmem:[#allocation4 + $0x3b0] sm:$0xff]  ;;  %v383_v29 = vld [vmem:[#allocation4 + $0x3e8] sm:$0xff] }
 0x1a6   :  { %928 = vmatprep.subr.bf16.mxu1 %v927_v31  ;;  %973 = vmatprep.subr.bf16.mxu0 %v1095_v0  ;;  %v396_v31 = vld [vmem:[#allocation4 + $0x450] sm:$0xff]  ;;  %v992_v33 = vpack.c.bf16 %v383_v29, %v376_v28 }
 0x1a7   :  { %v955_v35 = vpack.c.bf16 %v396_v31, %v389_v30 }
 0x1a9   :  { %930 = vmatpush1.bf16.msra.mxu1 %v929_v37  ;;  %975 = vmatpush1.bf16.msra.mxu0 %v974_v38  ;;  %v390_v37 = vld [vmem:[#allocation4 + $0x420] sm:$0xff]  ;;  %v397_v38 = vld [vmem:[#allocation4 + $0x458] sm:$0xff] }
 0x1aa   :  { %932 = vmatprep.subr.bf16.mxu1 %v931_v40  ;;  %976 = vmatprep.subr.bf16.mxu0 %v1095_v0  ;;  %v410_v40 = vld [vmem:[#allocation4 + $0x4c0] sm:$0xff]  ;;  %v995_v42 = vpack.c.bf16 %v397_v38, %v390_v37 }
 0x1ab   :  { %v959_v44 = vpack.c.bf16 %v410_v40, %v403_v39 }
 0x1ad   :  { %934 = vmatpush1.bf16.msra.mxu1 %v933_v46  ;;  %978 = vmatpush1.bf16.msra.mxu0 %v977_v47  ;;  %v404_v46 = vld [vmem:[#allocation4 + $0x490] sm:$0xff]  ;;  %v411_v47 = vld [vmem:[#allocation4 + $0x4c8] sm:$0xff] }
 0x1ae   :  { %936 = vmatprep.subr.bf16.mxu1 %v935_v49  ;;  %979 = vmatprep.subr.bf16.mxu0 %v1095_v0  ;;  %v424_v49 = vld [vmem:[#allocation4 + $0x530] sm:$0xff]  ;;  %v998_v51 = vpack.c.bf16 %v411_v47, %v404_v46 }
 0x1af   :  { %v963_v53 = vpack.c.bf16 %v424_v49, %v417_v48 }
 0x1b1   :  { %938 = vmatpush1.bf16.msra.mxu1 %v937_v55  ;;  %981 = vmatpush1.bf16.msra.mxu0 %v980_v56  ;;  %v418_v55 = vld [vmem:[#allocation4 + $0x500] sm:$0xff]  ;;  %v425_v56 = vld [vmem:[#allocation4 + $0x538] sm:$0xff] }
 0x1b2   :  { %940 = vmatprep.subr.bf16.mxu1 %v939_v58  ;;  %982 = vmatprep.subr.bf16.mxu0 %v1095_v0  ;;  %v1001_v58 = vpack.c.bf16 %v425_v56, %v418_v55 }
 0x1b5   :  { %942 = vmatpush1.bf16.msra.mxu1 %v941_v1  ;;  %984 = vmatpush1.bf16.msra.mxu0 %v983_v2  ;;  %v64_v1 = vld [vmem:[#allocation6 + $0x2] ss:$4 sm:$0x7f]  ;;  %v448_v2 = vsub.s32 3, %v1166_v19 }
 0x1b6   :  { %944 = vmatprep.subr.bf16.mxu1 %v943_v4  ;;  %985 = vmatprep.subr.bf16.mxu0 %v1095_v0  ;;  %v445_v3 = vrot.slane %v64_v1, %v444_v63  ;;  %v441_v4 = vrot.slane %v64_v1, %v1172_v21  ;;  %v460_v21 = vsub.s32 6, %v1166_v19 }
 0x1b7   :  { %v449_v5 = vrot.slane %v64_v1, %v448_v2 }
 0x1b8   :  { %v461_v15 = vrot.slane %v64_v1, %v460_v21 }
 0x1b9   :  { %946 = vmatpush1.bf16.msra.mxu1 %v945_v10  ;;  %987 = vmatpush1.bf16.msra.mxu0 %v986_v11 }
 0x1ba   :  { %948 = vmatprep.subr.bf16.mxu1 %v947_v13  ;;  %988 = vmatprep.subr.bf16.mxu0 %v1095_v0 }
 0x1bd   :  { %950 = vmatpush1.bf16.msra.mxu1 %v949_v23  ;;  %990 = vmatpush1.bf16.msra.mxu0 %v989_v24 }
 0x1be   :  { %952 = vmatprep.subr.bf16.mxu1 %v951_v26  ;;  %991 = vmatprep.subr.bf16.mxu0 %v1095_v0 }
 0x1c1   :  { %954 = vmatpush1.bf16.msra.mxu1 %v953_v32  ;;  %993 = vmatpush1.bf16.msra.mxu0 %v992_v33 }
 0x1c2   :  { %956 = vmatprep.subr.bf16.mxu1 %v955_v35  ;;  %994 = vmatprep.subr.bf16.mxu0 %v1095_v0 }
 0x1c5   :  { %958 = vmatpush1.bf16.msra.mxu1 %v957_v41  ;;  %996 = vmatpush1.bf16.msra.mxu0 %v995_v42 }
 0x1c6   :  { %960 = vmatprep.subr.bf16.mxu1 %v959_v44  ;;  %997 = vmatprep.subr.bf16.mxu0 %v1095_v0 }
 0x1c9   :  { %962 = vmatpush1.bf16.msra.mxu1 %v961_v50  ;;  %999 = vmatpush1.bf16.msra.mxu0 %v998_v51 }
 0x1ca   :  { %964 = vmatprep.subr.bf16.mxu1 %v963_v53  ;;  %1000 = vmatprep.subr.bf16.mxu0 %v1095_v0  ;;  %v437_v0 = vrot.slane %v64_v1, %v1169_v20  ;;  %v452_v20 = vsub.s32 4, %v1166_v19 }
 0x1cc   :  { %v453_v14 = vrot.slane %v64_v1, %v452_v20 }
 0x1cd   :  { %966 = vmatpush1.bf16.msra.mxu1 %v965_v57  ;;  %1002 = vmatpush1.bf16.msra.mxu0 %v1001_v58 }
 0x1ce   :  { %662 = vmatprep.subr.mxu1 %v431_v59  ;;  %733 = vmatprep.subr.mxu0 %v1096_v60 }
 0x1d1   :  { %663 = vmatpush1.msra.mxu1 %v430_v61  ;;  %734 = vmatpush1.msra.mxu0 %v432_v62 }
 0x1d2   :  { %679 = vmatmul.mubr.f32.vlgmr.msra.gmra.mrb[2].mxu1 %v1190_v18  ;;  %750 = vmatmul.mubr.f32.vlgmr.msra.gmra.mrb[4].mxu0 %v1190_v18  ;;  %v456_v18 = vsub.s32 5, %v1166_v19 }
 0x1d4   :  { %v457_v16 = vrot.slane %v64_v1, %v456_v18 }
 0x273   :  { %v538_v6 = vpop.f32.mrb[0].mxu1  ;;  %v609_v7 = vpop.f32.mrb[2].mxu0 }
 0x274   :  { %v539_v8 = vadd.f32 %v538_v6, %v437_v0  ;;  %v610_v9 = vadd.f32 %v609_v7, %v445_v3  ;;  %v540_v10 = vpop.f32.mrb[1].mxu1  ;;  %v611_v11 = vpop.f32.mrb[3].mxu0 }
 0x275   :  { %v541_v12 = vadd.f32 %v540_v10, %v441_v4  ;;  %v612_v13 = vadd.f32 %v611_v11, %v449_v5 }
 0x276   :  { %755 = vst [vmem:[%s1244_s5] sm:$0xff] %v539_v8  ;;  %757 = vst [vmem:[%s1244_s5 + $0x10] sm:$0xff] %v610_v9 }
 0x277   :  { %756 = vst [vmem:[%s1244_s5 + $0x8] sm:$0xff] %v541_v12  ;;  %758 = vst [vmem:[%s1244_s5 + $0x18] sm:$0xff] %v612_v13 }
 0x2a5   :  { %v680_v17 = vpop.f32.mrb[2].mxu1  ;;  %v751_v22 = vpop.f32.mrb[4].mxu0 }
 0x2a6   :  { %v681_v23 = vadd.f32 %v680_v17, %v453_v14  ;;  %v752_v24 = vadd.f32 %v751_v22, %v461_v15  ;;  %v682_v25 = vpop.f32.mrb[3].mxu1  ;;  %v753_v26 = vpop.f32.mrb[5].mxu0 }
 0x2a7   :  { %v683_v27 = vadd.f32 %v682_v25, %v457_v16 }
 0x2a8   :  { %759 = vst [vmem:[%s1244_s5 + $0x20] sm:$0xff] %v681_v23  ;;  %762 = vst.msk [vmem:[%s1244_s5 + $0x30] sm:$0xff] %vm761_vm1, %v752_v24 }
 0x2a9   :  { %760 = vst [vmem:[%s1244_s5 + $0x28] sm:$0xff] %v683_v27 }
 0x2aa   :  { %767 = vsyncpa [#allocation3], 1 }
 0x2ab   :  { %768 = vsyncpa [#allocation5], 1 }

</bundles_post_ra>
